<compile_context>
chip_gen: v7x
topology: tpu7x:2x2x1
jax: 0.10.0
libtpu: 0.0.40
codegen_flags: <defaults>
</compile_context>

<pallas_src>
import jax
import jax.numpy as jnp
from jax.experimental import pallas as pl
from jax.experimental.pallas import tpu as pltpu

_LANE = 128


def _round_up(x, m):
    return -(-x // m) * m


def _vmem_budgets():
    """(compiler vmem limit, tiling budget) in bytes, generation-aware."""
    try:
        phys = int(pltpu.get_tpu_info().vmem_capacity_bytes)
    except Exception:
        phys = 64 << 20  # conservative fallback: v7x per-TensorCore VMEM
    limit = min((phys * 3) // 4, 100 << 20)  # ~48 MiB on v7x, ~96 MiB on v5e/v6e
    budget = (limit * 3) // 4                # headroom for compiler temporaries
    return limit, budget


def _choose_block(batch, dim, itemsize, requested, budget):
    """Tile size along the batch axis.

    A multi-tile block must be a multiple of 128 (it is the lane dim of the
    pre-transposed B operand); a single tile that covers the whole padded
    batch only needs sublane alignment (8 for f32, 16 for bf16).
    """
    sub = 16 if itemsize < 4 else 8
    if requested is not None:
        if requested >= batch:
            return _round_up(requested, sub)
        assert requested % _LANE == 0, (
            "block_size must be a multiple of 128 unless it covers the batch")
        return requested
    if batch <= _LANE:
        return _round_up(batch, sub)          # single tile (full-dim exempt)
    b128 = _round_up(batch, _LANE)
    # Keep >= 2 row blocks so both v7x TensorCores get work; cap at 1024.
    cap = min(1024, max(_LANE, ((b128 // 2) // _LANE) * _LANE))

    def fits(t):
        # double-buffered A row tile + double-buffered B^T column tile
        # + ~3 live (T, T) f32 intermediates (scores, exp, temporaries)
        return 4 * t * dim * itemsize + 12 * t * t + 8 * t + 4096 <= budget

    t = cap
    while t > _LANE and not fits(t):
        t -= _LANE
    return t


def _make_mnrl_kernel(batch, block_n, need_mask):
    """batch: true (unpadded) batch size; block_n: tile size; need_mask: pad?"""

    def kernel(a_ref, bt_ref, lse_ref, diag_ref, m_scr, l_scr):
        i = pl.program_id(0)
        j = pl.program_id(1)
        n_j = pl.num_programs(1)

        @pl.when(j == 0)
        def _init():
            m_scr[...] = jnp.full_like(m_scr, -jnp.inf)
            l_scr[...] = jnp.zeros_like(l_scr)

        # (T, T) score tile: (T, D) @ (D, T) straight on the MXU, native input
        # dtype, f32 accumulation.  B was transposed once in the wrapper so no
        # per-tile transpose is needed.
        s = jnp.dot(a_ref[...], bt_ref[...], preferred_element_type=jnp.float32)

        # Positive-pair (diagonal) scores come for free from the i == j tile.
        @pl.when(i == j)
        def _diag():
            r = jax.lax.broadcasted_iota(jnp.int32, s.shape, 0)
            c = jax.lax.broadcasted_iota(jnp.int32, s.shape, 1)
            diag_ref[...] = jnp.sum(
                jnp.where(r == c, s, 0.0), axis=1, keepdims=True)

        def lse_update(scores):
            m_prev = m_scr[...]
            m_new = jnp.maximum(m_prev, jnp.max(scores, axis=1, keepdims=True))
            alpha = jnp.exp(m_prev - m_new)
            l_scr[...] = alpha * l_scr[...] + jnp.sum(
                jnp.exp(scores - m_new), axis=1, keepdims=True)
            m_scr[...] = m_new

        if need_mask:
            # Only the last column block contains padded columns; every other
            # step takes the cheap unmasked path (no iota/compare/select).
            @pl.when(j < n_j - 1)
            def _unmasked():
                lse_update(s)

            @pl.when(j == n_j - 1)
            def _masked():
                col = j * block_n + jax.lax.broadcasted_iota(
                    jnp.int32, s.shape, 1)
                lse_update(jnp.where(col < batch, s, -jnp.inf))
        else:
            lse_update(s)

        @pl.when(j == n_j - 1)
        def _finalize():
            lse_ref[...] = m_scr[...] + jnp.log(l_scr[...])

    return kernel


def multiple_negatives_ranking_loss(embeddings_a, embeddings_b, *,
                                    block_size=None, compute_dtype=None):
    """embeddings_a, embeddings_b: (batch, dim). Returns scalar f32 loss."""
    B, D = embeddings_a.shape
    assert embeddings_b.shape == (B, D)

    if compute_dtype is not None:  # e.g. jnp.bfloat16: bf16-native MXU, half HBM
        embeddings_a = embeddings_a.astype(compute_dtype)
        embeddings_b = embeddings_b.astype(compute_dtype)

    itemsize = jnp.dtype(embeddings_a.dtype).itemsize
    vmem_limit, vmem_budget = _vmem_budgets()
    t = _choose_block(B, D, itemsize, block_size, vmem_budget)
    b_pad = _round_up(B, t)
    need_mask = b_pad != B

    a_in, b_in = embeddings_a, embeddings_b
    if need_mask:
        pad = b_pad - B
        a_in = jnp.pad(a_in, ((0, pad), (0, 0)))
        b_in = jnp.pad(b_in, ((0, pad), (0, 0)))

    # One-time transpose so the column stream is MXU-native (D, T) tiles.
    bt_in = b_in.T

    n_blocks = b_pad // t
    kernel = _make_mnrl_kernel(B, t, need_mask)

    flops = 2 * b_pad * b_pad * D
    # A row tile is resident across j (read once); the B^T column stream is
    # re-read once per row block.
    bytes_accessed = (1 + n_blocks) * b_pad * D * itemsize + 2 * b_pad * 4

    lse, diag = pl.pallas_call(
        kernel,
        out_shape=(
            jax.ShapeDtypeStruct((b_pad, 1), jnp.float32),
            jax.ShapeDtypeStruct((b_pad, 1), jnp.float32),
        ),
        grid_spec=pltpu.PrefetchScalarGridSpec(
            num_scalar_prefetch=0,
            grid=(n_blocks, n_blocks),
            in_specs=[
                pl.BlockSpec((t, D), lambda i, j: (i, 0)),   # A row tile
                # TODO(synk): add pipeline_mode=pl.Buffered(3) here if an xprof
                # trace shows exposed DMA on the column stream (mem-bound case).
                pl.BlockSpec((D, t), lambda i, j: (0, j)),   # B^T column tile
            ],
            out_specs=[
                pl.BlockSpec((t, 1), lambda i, j: (i, 0)),   # per-row logsumexp
                pl.BlockSpec((t, 1), lambda i, j: (i, 0)),   # per-row positive
            ],
            scratch_shapes=[
                pltpu.VMEM((t, 1), jnp.float32),  # running max (m)
                pltpu.VMEM((t, 1), jnp.float32),  # running sumexp (l)
            ],
        ),
        compiler_params=pltpu.CompilerParams(
            dimension_semantics=("parallel", "arbitrary"),
            vmem_limit_bytes=vmem_limit,
        ),
        cost_estimate=pl.CostEstimate(
            flops=flops,
            transcendentals=b_pad * b_pad + b_pad,
            bytes_accessed=bytes_accessed,
        ),
    )(a_in, bt_in)

    # Tiny final reduction (drop padded rows); single 1/B scalar multiply.
    inv_b = jnp.float32(1.0 / B)
    return (jnp.sum(lse[:B, 0]) - jnp.sum(diag[:B, 0])) * inv_b


def _reference(embeddings_a, embeddings_b):
    scores = embeddings_a.astype(jnp.float32) @ embeddings_b.astype(jnp.float32).T
    diag_mean = jnp.mean(jnp.diag(scores))
    mean_lse = jnp.mean(jax.nn.logsumexp(scores, axis=1))
    return -diag_mean + mean_lse


if __name__ == "__main__":
    key = jax.random.PRNGKey(0)

    # Case 1: small aligned shapes (single-tile grid).
    ka, kb = jax.random.split(key)
    a1 = jax.random.normal(ka, (8, 128), dtype=jnp.float32)
    b1 = jax.random.normal(kb, (8, 128), dtype=jnp.float32)
    loss1 = jax.block_until_ready(multiple_negatives_ranking_loss(a1, b1))
    ref1 = jax.block_until_ready(_reference(a1, b1))
    assert jnp.allclose(loss1, ref1, rtol=1e-5, atol=1e-5), (loss1, ref1)

    # Case 2: ragged batch (row padding + -inf column masking, single tile).
    kc, kd = jax.random.split(kb)
    a2 = jax.random.normal(kc, (12, 256), dtype=jnp.float32)
    b2 = jax.random.normal(kd, (12, 256), dtype=jnp.float32)
    loss2 = jax.block_until_ready(multiple_negatives_ranking_loss(a2, b2))
    ref2 = jax.block_until_ready(_reference(a2, b2))
    assert jnp.allclose(loss2, ref2, rtol=1e-5, atol=1e-5), (loss2, ref2)

    # Case 3: multi-tile grid with explicit block size (online logsumexp).
    ke, kf = jax.random.split(kd)
    a3 = jax.random.normal(ke, (256, 128), dtype=jnp.float32)
    b3 = jax.random.normal(kf, (256, 128), dtype=jnp.float32)
    loss3 = jax.block_until_ready(
        multiple_negatives_ranking_loss(a3, b3, block_size=128))
    ref3 = jax.block_until_ready(_reference(a3, b3))
    assert jnp.allclose(loss3, ref3, rtol=1e-4, atol=1e-4), (loss3, ref3)

    # Case 4: ragged + multi-tile (masked last column block, auto block size,
    # >= 2 row blocks for megacore).
    kg, kh = jax.random.split(kf)
    a4 = jax.random.normal(kg, (200, 128), dtype=jnp.float32)
    b4 = jax.random.normal(kh, (200, 128), dtype=jnp.float32)
    loss4 = jax.block_until_ready(multiple_negatives_ranking_loss(a4, b4))
    ref4 = jax.block_until_ready(_reference(a4, b4))
    assert jnp.allclose(loss4, ref4, rtol=1e-4, atol=1e-4), (loss4, ref4)

    # Case 5: bf16 compute path (bf16 MXU inputs, f32 accumulation); compare
    # against the f32 reference evaluated on the same bf16-rounded inputs.
    a5 = a3.astype(jnp.bfloat16)
    b5 = b3.astype(jnp.bfloat16)
    loss5 = jax.block_until_ready(
        multiple_negatives_ranking_loss(a3, b3, compute_dtype=jnp.bfloat16))
    ref5 = jax.block_until_ready(_reference(a5, b5))
    assert jnp.allclose(loss5, ref5, rtol=1e-3, atol=1e-3), (loss5, ref5)

    print("KERNEL_OK")
</pallas_src>

<mosaic_0001>
module attributes {stable_mosaic.version = 11 : i64} {
  func.func @kernel(%arg0: i32, %arg1: i32, %arg2: memref<8x128xf32, #tpu.memory_space<vmem>>, %arg3: memref<128x8xf32, #tpu.memory_space<vmem>>, %arg4: memref<8x1xf32, #tpu.memory_space<vmem>>, %arg5: memref<8x1xf32, #tpu.memory_space<vmem>>, %arg6: memref<8x1xf32, #tpu.memory_space<vmem>>, %arg7: memref<8x1xf32, #tpu.memory_space<vmem>>) attributes {dimension_semantics = [#tpu.dimension_semantics<parallel>, #tpu.dimension_semantics<arbitrary>], iteration_bounds = array<i64: 1, 1>, scalar_prefetch = 0 : i64, scratch_operands = 2 : i64, tpu.core_type = #tpu.core_type<tc>, window_params = [{transform_indices = @transform_0, window_bounds = array<i64: 8, 128>}, {transform_indices = @transform_1, window_bounds = array<i64: 128, 8>}, {transform_indices = @transform_2, window_bounds = array<i64: 8, 1>}, {transform_indices = @transform_3, window_bounds = array<i64: 8, 1>}]} {
    %c0_i32 = arith.constant 0 : i32
    %0 = arith.cmpi eq, %arg1, %c0_i32 : i32
    %1 = arith.extui %0 : i1 to i32
    %c0_i32_0 = arith.constant 0 : i32
    %2 = arith.cmpi ne, %1, %c0_i32_0 : i32
    scf.if %2 {
      %cst_17 = arith.constant 0xFF800000 : f32
      %28 = vector.broadcast %cst_17 : f32 to vector<8x1xf32>
      %c0_18 = arith.constant 0 : index
      %c0_19 = arith.constant 0 : index
      %29 = vector.load %arg6[%c0_18, %c0_19] : memref<8x1xf32, #tpu.memory_space<vmem>>, vector<8x1xf32>
      tpu.vector_store %arg6[%c0_18, %c0_19], %28 {strides = array<i32>} : memref<8x1xf32, #tpu.memory_space<vmem>>, vector<8x1xf32>,
      %cst_20 = arith.constant 0.000000e+00 : f32
      %30 = vector.broadcast %cst_20 : f32 to vector<8x1xf32>
      %c0_21 = arith.constant 0 : index
      %c0_22 = arith.constant 0 : index
      %31 = vector.load %arg7[%c0_21, %c0_22] : memref<8x1xf32, #tpu.memory_space<vmem>>, vector<8x1xf32>
      tpu.vector_store %arg7[%c0_21, %c0_22], %30 {strides = array<i32>} : memref<8x1xf32, #tpu.memory_space<vmem>>, vector<8x1xf32>,
    } else {
    }
    %c0 = arith.constant 0 : index
    %c0_1 = arith.constant 0 : index
    %3 = vector.load %arg2[%c0, %c0_1] : memref<8x128xf32, #tpu.memory_space<vmem>>, vector<8x128xf32>
    %c0_2 = arith.constant 0 : index
    %c0_3 = arith.constant 0 : index
    %4 = vector.load %arg3[%c0_2, %c0_3] : memref<128x8xf32, #tpu.memory_space<vmem>>, vector<128x8xf32>
    %cst = arith.constant dense<0.000000e+00> : vector<8x8xf32>
    %5 = tpu.matmul %3, %4, %cst {dimension_numbers = #tpu.dot_dimension_numbers<[1], [0], [0], [1], [0, 0, 1, 1], [], []>} : vector<8x128xf32>, vector<128x8xf32>, vector<8x8xf32> -> vector<8x8xf32>
    %6 = arith.cmpi eq, %arg0, %arg1 : i32
    %7 = arith.extui %6 : i1 to i32
    %c0_i32_4 = arith.constant 0 : i32
    %8 = arith.cmpi ne, %7, %c0_i32_4 : i32
    scf.if %8 {
      %28 = tpu.iota {dimensions = array<i32: 0>} : vector<8x8xi32>
      %29 = tpu.iota {dimensions = array<i32: 1>} : vector<8x8xi32>
      %30 = arith.cmpi eq, %28, %29 : vector<8x8xi32>
      %cst_17 = arith.constant 0.000000e+00 : f32
      %31 = vector.broadcast %cst_17 : f32 to vector<8x8xf32>
      %32 = arith.select %30, %5, %31 : vector<8x8xi1>, vector<8x8xf32>
      %cst_18 = arith.constant dense<0.000000e+00> : vector<8xf32>
      %33 = vector.multi_reduction <add>, %32, %cst_18 [1] : vector<8x8xf32> to vector<8xf32>
      %34 = vector.shape_cast %33 : vector<8xf32> to vector<8x1xf32>
      %c0_19 = arith.constant 0 : index
      %c0_20 = arith.constant 0 : index
      %35 = vector.load %arg5[%c0_19, %c0_20] : memref<8x1xf32, #tpu.memory_space<vmem>>, vector<8x1xf32>
      tpu.vector_store %arg5[%c0_19, %c0_20], %34 {strides = array<i32>} : memref<8x1xf32, #tpu.memory_space<vmem>>, vector<8x1xf32>,
    } else {
    }
    %c0_5 = arith.constant 0 : index
    %c0_6 = arith.constant 0 : index
    %9 = vector.load %arg6[%c0_5, %c0_6] : memref<8x1xf32, #tpu.memory_space<vmem>>, vector<8x1xf32>
    %cst_7 = arith.constant dense<0xFF800000> : vector<8xf32>
    %10 = vector.multi_reduction <maximumf>, %5, %cst_7 [1] : vector<8x8xf32> to vector<8xf32>
    %11 = vector.shape_cast %10 : vector<8xf32> to vector<8x1xf32>
    %12 = arith.maximumf %9, %11 : vector<8x1xf32>
    %13 = arith.subf %9, %12 : vector<8x1xf32>
    %14 = math.exp %13 : vector<8x1xf32>
    %c0_8 = arith.constant 0 : index
    %c0_9 = arith.constant 0 : index
    %15 = vector.load %arg7[%c0_8, %c0_9] : memref<8x1xf32, #tpu.memory_space<vmem>>, vector<8x1xf32>
    %16 = arith.mulf %14, %15 : vector<8x1xf32>
    %17 = vector.broadcast %12 : vector<8x1xf32> to vector<8x8xf32>
    %18 = arith.subf %5, %17 : vector<8x8xf32>
    %19 = math.exp %18 : vector<8x8xf32>
    %cst_10 = arith.constant dense<0.000000e+00> : vector<8xf32>
    %20 = vector.multi_reduction <add>, %19, %cst_10 [1] : vector<8x8xf32> to vector<8xf32>
    %21 = vector.shape_cast %20 : vector<8xf32> to vector<8x1xf32>
    %22 = arith.addf %16, %21 : vector<8x1xf32>
    %c0_11 = arith.constant 0 : index
    %c0_12 = arith.constant 0 : index
    %23 = vector.load %arg7[%c0_11, %c0_12] : memref<8x1xf32, #tpu.memory_space<vmem>>, vector<8x1xf32>
    tpu.vector_store %arg7[%c0_11, %c0_12], %22 {strides = array<i32>} : memref<8x1xf32, #tpu.memory_space<vmem>>, vector<8x1xf32>,
    %c0_13 = arith.constant 0 : index
    %c0_14 = arith.constant 0 : index
    %24 = vector.load %arg6[%c0_13, %c0_14] : memref<8x1xf32, #tpu.memory_space<vmem>>, vector<8x1xf32>
    tpu.vector_store %arg6[%c0_13, %c0_14], %12 {strides = array<i32>} : memref<8x1xf32, #tpu.memory_space<vmem>>, vector<8x1xf32>,
    %c0_i32_15 = arith.constant 0 : i32
    %25 = arith.cmpi eq, %arg1, %c0_i32_15 : i32
    %26 = arith.extui %25 : i1 to i32
    %c0_i32_16 = arith.constant 0 : i32
    %27 = arith.cmpi ne, %26, %c0_i32_16 : i32
    scf.if %27 {
      %c0_17 = arith.constant 0 : index
      %c0_18 = arith.constant 0 : index
      %28 = vector.load %arg6[%c0_17, %c0_18] : memref<8x1xf32, #tpu.memory_space<vmem>>, vector<8x1xf32>
      %c0_19 = arith.constant 0 : index
      %c0_20 = arith.constant 0 : index
      %29 = vector.load %arg7[%c0_19, %c0_20] : memref<8x1xf32, #tpu.memory_space<vmem>>, vector<8x1xf32>
      %30 = math.log %29 : vector<8x1xf32>
      %31 = arith.addf %28, %30 : vector<8x1xf32>
      %c0_21 = arith.constant 0 : index
      %c0_22 = arith.constant 0 : index
      %32 = vector.load %arg4[%c0_21, %c0_22] : memref<8x1xf32, #tpu.memory_space<vmem>>, vector<8x1xf32>
      tpu.vector_store %arg4[%c0_21, %c0_22], %31 {strides = array<i32>} : memref<8x1xf32, #tpu.memory_space<vmem>>, vector<8x1xf32>,
    } else {
    }
    return
  }
  func.func @transform_0(%arg0: i32, %arg1: i32) -> (i32, i32) {
    %c0_i32 = arith.constant 0 : i32
    %c0_i32_0 = arith.constant 0 : i32
    return %arg0, %c0_i32 : i32, i32
  }
  func.func @transform_1(%arg0: i32, %arg1: i32) -> (i32, i32) {
    %c0_i32 = arith.constant 0 : i32
    %c0_i32_0 = arith.constant 0 : i32
    return %c0_i32, %arg1 : i32, i32
  }
  func.func @transform_2(%arg0: i32, %arg1: i32) -> (i32, i32) {
    %c0_i32 = arith.constant 0 : i32
    %c0_i32_0 = arith.constant 0 : i32
    return %arg0, %c0_i32 : i32, i32
  }
  func.func @transform_3(%arg0: i32, %arg1: i32) -> (i32, i32) {
    %c0_i32 = arith.constant 0 : i32
    %c0_i32_0 = arith.constant 0 : i32
    return %arg0, %c0_i32 : i32, i32
  }
}

</mosaic_0001>

<bundles_post_ra>
// kernel: tpu_custom_call.1
= control target key start
LH: loop header
LB: loop body
LE: loop exit
PB: predicated region body
PF: predicated region fallthrough
CT: control target
= control target key end

     0   :  { %vm17_vm0 = vcmask 7168   ;;  %v254_v0 = vmov 0.0|0.0   ;;  %v255_v4 = vmov 0.0   ;;  %vm256_vm1 = vmmov 0   ;;  %s345_s1 = inlined_call_operand.vmem [shape: f32[128,8], index: 1, kind: input, shape index: {}]   ;;  %s346_s0 = inlined_call_operand.vmem [shape: f32[8,128], index: 0, kind: input, shape index: {}]   ;;  %s347_s3 = inlined_call_operand.vmem [shape: f32[8,1], index: 3, kind: output, shape index: {1}]   ;;  %s348_s2 = inlined_call_operand.vmem [shape: f32[8,1], index: 2, kind: output, shape index: {0}]  }
   0x1   :  { %218 = vmatprep.subr.bf16.mxu0 %v254_v0  ;;  %v21_v1 = vld [vmem:[%s345_s1] sm:$0xff]  ;;  %v22_v2 = vld [vmem:[%s345_s1 + $0x8] sm:$0xff]  ;;  %v23_v3 = vld [vmem:[%s345_s1 + $0x10] sm:$0xff]  ;;  %19 = vst.msk [vmem:[#allocation3] sm:$0xff] %vm17_vm0, %v255_v4  ;;  %215 = vmatprep.mubr.msk.f32.mxu0 %vm256_vm1, %v255_v4  ;;  %v257_v27 = vmov -inf   ;;  %vm117_vm2 = vcmask 64512   ;;  %v111_v39 = vlaneseq }
   0x2   :  { %v219_v5 = vpack.c.bf16 %v22_v2, %v21_v1  ;;  %v24_v6 = vld [vmem:[%s345_s1 + $0x18] sm:$0xff]  ;;  %v25_v8 = vld [vmem:[%s345_s1 + $0x20] sm:$0xff]  ;;  %v26_v9 = vld [vmem:[%s345_s1 + $0x28] sm:$0xff]  ;;  %18 = vst.msk [vmem:[#allocation2] sm:$0xff] %vm17_vm0, %v257_v27  ;;  %v258_v31 = vmov 0  }
   0x3   :  { %v222_v7 = vpack.c.bf16 %v24_v6, %v23_v3  ;;  %v225_v10 = vpack.c.bf16 %v26_v9, %v25_v8  ;;  %v27_v11 = vld [vmem:[%s345_s1 + $0x30] sm:$0xff]  ;;  %v28_v12 = vld [vmem:[%s345_s1 + $0x38] sm:$0xff]  ;;  %v29_v14 = vld [vmem:[%s345_s1 + $0x40] sm:$0xff]  ;;  %247 = vset.pattern.permute.xlu0 %v258_v31  ;;  %v112_v40 = vshrl.u32 %v111_v39, 7  ;;  %v114_v41 = vand.u32 127, %v111_v39 }
   0x4   :  { %220 = vmatpush3.bf16.msra.mxu0 %v219_v5  ;;  %v228_v13 = vpack.c.bf16 %v28_v12, %v27_v11  ;;  %v30_v15 = vld [vmem:[%s345_s1 + $0x48] sm:$0xff]  ;;  %v31_v17 = vld [vmem:[%s345_s1 + $0x50] sm:$0xff]  ;;  %v32_v18 = vld [vmem:[%s345_s1 + $0x58] sm:$0xff] }
   0x5   :  { %221 = vmatprep.subr.bf16.mxu0 %v254_v0  ;;  %v231_v16 = vpack.c.bf16 %v30_v15, %v29_v14  ;;  %v234_v19 = vpack.c.bf16 %v32_v18, %v31_v17  ;;  %v33_v20 = vld [vmem:[%s345_s1 + $0x60] sm:$0xff]  ;;  %v34_v21 = vld [vmem:[%s345_s1 + $0x68] sm:$0xff]  ;;  %v35_v23 = vld [vmem:[%s345_s1 + $0x70] sm:$0xff]  ;;  %vm115_vm3 = vcmp.eq.s32.totalorder %v112_v40, %v114_v41 }
   0x6   :  { %v237_v22 = vpack.c.bf16 %v34_v21, %v33_v20  ;;  %v36_v24 = vld [vmem:[%s345_s1 + $0x78] sm:$0xff]  ;;  %v20_v26 = vld [vmem:[%s346_s0] sm:$0xff] }
   0x7   :  { %v240_v25 = vpack.c.bf16 %v36_v24, %v35_v23 }
   0x8   :  { %223 = vmatpush3.bf16.msra.mxu0 %v222_v7  ;;  %v132_v48 = vld [vmem:[#allocation3] sm:$0xff] }
   0x9   :  { %224 = vmatprep.subr.bf16.mxu0 %v254_v0  ;;  %v123_v32 = vld [vmem:[#allocation2] sm:$0xff] }
   0xc   :  { %226 = vmatpush3.bf16.msra.mxu0 %v225_v10 }
   0xd   :  { %227 = vmatprep.subr.bf16.mxu0 %v254_v0 }
  0x10   :  { %229 = vmatpush3.bf16.msra.mxu0 %v228_v13 }
  0x11   :  { %230 = vmatprep.subr.bf16.mxu0 %v254_v0 }
  0x14   :  { %232 = vmatpush3.bf16.msra.mxu0 %v231_v16 }
  0x15   :  { %233 = vmatprep.subr.bf16.mxu0 %v254_v0 }
  0x18   :  { %235 = vmatpush3.bf16.msra.mxu0 %v234_v19 }
  0x19   :  { %236 = vmatprep.subr.bf16.mxu0 %v254_v0 }
  0x1c   :  { %238 = vmatpush3.bf16.msra.mxu0 %v237_v22 }
  0x1d   :  { %239 = vmatprep.subr.bf16.mxu0 %v254_v0 }
  0x20   :  { %241 = vmatpush3.bf16.msra.mxu0 %v240_v25 }
  0x23   :  { %216 = vmatmul.mubr.f32.vlgmr.msra.gmra.mrb[0].mxu0 %v20_v26 }
  0xf6   :  { %v103_v28 = vpop.f32.mrb[0].mxu0 }
  0xf7   :  { %v217_v29 = vpop.f32.mrb[1].mxu0  ;;  %v125_v30 = vsel %vm117_vm2, %v103_v28, -inf  ;;  %v116_v44 = vsel %vm115_vm3, %v103_v28, 0.0 }
  0xf8   :  { %126 = vmax.xlane.f32.xlu0 %v125_v30  ;;  %v118_v45 = vsel %vm117_vm2, %v116_v44, 0.0 }
 0x185   :  { %v127_v33 = vpop.xlane.xlu0 %126 }
 0x186   :  { %v128_v34 = vmax.f32 %v123_v32, %v127_v33 }
 0x188   :  { %v129_v35 = vsub.f32 %v123_v32, %v128_v34  ;;  %148 = vst.msk [vmem:[#allocation2] sm:$0xff] %vm17_vm0, %v128_v34  ;;  %136 = vperm.xlu0 %247, %v128_v34  }
 0x18a   :  { %v130_v46 = vmul.f32 1.442695, %v129_v35 }
 0x18f   :  { %v152_v56 = vld [vmem:[#allocation2] sm:$0xff] }
 0x207   :  { %v137_v36 = vpop.permute.xlu0 %136 }
 0x208   :  { %v139_v37 = vsub.f32 %v103_v28, %v137_v36 }
 0x20a   :  { %v140_v38 = vmul.f32 1.442695, %v139_v37 }
 0x20c   :  { %248 = vpow2.f32 %v140_v38 }
 0x20d   :  { %250 = vpow2.f32 %v130_v46 }
 0x216   :  { %v249_v42 = vpop.eup %248 }
 0x217   :  { %v142_v43 = vsel %vm117_vm2, %v249_v42, 0.0  ;;  %v251_v47 = vpop.eup %250 }
 0x218   :  { %143 = vadd.xlane.f32.xlu1 %v142_v43  ;;  %v133_v49 = vmul.f32 %v251_v47, %v132_v48 }
 0x21c   :  { %119 = vadd.xlane.f32.xlu1 %v118_v45 }
 0x2a5   :  { %v144_v50 = vpop.xlane.xlu1 %143 }
 0x2a6   :  { %v145_v51 = vadd.f32 %v144_v50, %v133_v49 }
 0x2a8   :  { %147 = vst.msk [vmem:[#allocation3] sm:$0xff] %vm17_vm0, %v145_v51 }
 0x2a9   :  { %v120_v52 = vpop.xlane.xlu1 %119 }
 0x2aa   :  { %122 = vst.msk [vmem:[%s347_s3] sm:$0xff] %vm17_vm0, %v120_v52 }
 0x2af   :  { %v153_v53 = vld [vmem:[#allocation3] sm:$0xff] }
 0x2b0   :  { %252 = vlog2.f32 %v153_v53 }
 0x2ba   :  { %v253_v54 = vpop.eup %252 }
 0x2bb   :  { %v155_v55 = vmul.f32 0.6931472, %v253_v54 }
 0x2bd   :  { %v156_v57 = vadd.f32 %v155_v55, %v152_v56 }
 0x2bf   :  { %157 = vst.msk [vmem:[%s348_s2] sm:$0xff] %vm17_vm0, %v156_v57 }

</bundles_post_ra>
